<compile_context>
chip_gen: v7x
topology: tpu7x:2x2x1
jax: 0.10.0
libtpu: 0.0.40
codegen_flags: <defaults>
</compile_context>

<pallas_src>
import jax
import jax.numpy as jnp
from jax.experimental import pallas as pl
from jax.experimental.pallas import tpu as pltpu


def _drop_path_kernel(scale_ref, x_ref, o_ref):
    # scale_ref: (TB, 1) per-row scale in x's dtype (0 or 1/keep_prob),
    # resident across the feature axis.  One broadcast multiply, no upcast.
    o_ref[...] = x_ref[...] * scale_ref[...]


def _pack_factor(batch: int, feat: int) -> int:
    """Rows-per-sample factor G: split each sample's `feat` features across G
    rows so the sublane dim (batch*G) reaches >= 8 while the lane dim stays a
    multiple of 128.  G == 1 when batch >= 8 or feat is not 128-aligned."""
    if batch >= 8 or feat % 128 != 0:
        return 1
    m = feat // 128
    g = 1
    for cand in range(1, m + 1):
        if m % cand == 0:
            g = cand
            if batch * cand >= 8:
                break
    return g


def _pick_tiles(rows: int, cols: int, itemsize: int):
    """(TB, BN) block shape: VMEM-budgeted and pipeline-friendly."""
    LANE = 128
    # Batch tile: full when small, otherwise a sublane-aligned cap.
    tb = rows if rows <= 256 else 256
    # Feature tile: (in + out) blocks, double-buffered, under ~24 MiB
    # (<= 50% of the 48 MiB scoped-VMEM limit requested below).
    vmem_budget = 24 << 20
    bn = vmem_budget // (4 * tb * itemsize)
    bn = max(LANE, (bn // LANE) * LANE)
    # Guarantee >= 4 grid steps for multi-MiB tensors so DMAs overlap compute.
    total_bytes = rows * cols * itemsize
    if total_bytes >= (4 << 20):
        steps_b = pl.cdiv(rows, tb)
        want_f = max(1, pl.cdiv(4, steps_b))
        if want_f > 1:
            bn = min(bn, max(LANE, (pl.cdiv(cols, want_f) // LANE) * LANE))
    if bn >= cols:
        bn = cols
    return tb, bn


def drop_path(x, drop_prob: float, training: bool, *, key=None, seed: int = 0):
    """Pallas DropPath (stochastic depth) per sample over the leading axis.

    NOTE: thread a fresh `key` (or distinct `seed`) per training step and per
    DropPath layer -- reusing the default makes the drop pattern deterministic.
    """
    if drop_prob == 0.0 or not training:
        return x                                   # identity path, as in the module
    assert 0.0 < drop_prob < 1.0
    keep_prob = 1.0 - drop_prob

    B = x.shape[0]
    M = 1
    for d in x.shape[1:]:
        M *= d

    # Per-sample mask: floor(keep_prob + U[0,1)) in {0,1}; fold in 1/keep_prob.
    # Tiny O(B) op, computed once (hoisted out of the kernel grid).
    if key is None:
        key = jax.random.PRNGKey(seed)
    u = jax.random.uniform(key, (B, 1), dtype=jnp.float32)
    scale = (jnp.floor(keep_prob + u) * (1.0 / keep_prob)).astype(x.dtype)

    # Lane-dense 2-D view; split each sample across G rows when B is small so
    # vreg sublanes are fully used.  Pure row-major reshape -> no copy.
    G = _pack_factor(B, M)
    rows, cols = B * G, M // G
    x2d = x.reshape(rows, cols)
    if G > 1:
        scale = jnp.repeat(scale, G, axis=0)       # (rows, 1)

    itemsize = jnp.dtype(x.dtype).itemsize
    tb, bn = _pick_tiles(rows, cols, itemsize)
    grid = (pl.cdiv(rows, tb), pl.cdiv(cols, bn))

    out2d = pl.pallas_call(
        _drop_path_kernel,
        out_shape=jax.ShapeDtypeStruct((rows, cols), x.dtype),
        grid_spec=pltpu.PrefetchScalarGridSpec(
            num_scalar_prefetch=0,
            grid=grid,
            in_specs=[
                pl.BlockSpec((tb, 1), lambda i, j: (i, 0)),    # scale: resident per batch tile
                pl.BlockSpec((tb, bn), lambda i, j: (i, j)),   # x tile
            ],
            out_specs=pl.BlockSpec((tb, bn), lambda i, j: (i, j)),
        ),
        compiler_params=pltpu.CompilerParams(
            dimension_semantics=("parallel", "parallel"),
            vmem_limit_bytes=48 << 20),
    )(scale, x2d)
    return out2d.reshape(x.shape)


if __name__ == "__main__":
    key = jax.random.PRNGKey(0)
    B, C, H, W = 2, 4, 16, 16
    x = jax.random.normal(key, (B, C, H, W), jnp.float32)

    drop_prob = 0.25
    keep_prob = 1.0 - drop_prob

    # training path (stochastic)
    out = drop_path(x, drop_prob, training=True, seed=0)
    jax.block_until_ready(out)
    assert out.shape == x.shape and out.dtype == x.dtype

    # every batch row must be either dropped (all zeros) or kept and scaled by
    # exactly 1 / keep_prob -- the full DropPath semantics
    for b in range(B):
        kept = bool(jnp.allclose(out[b], x[b] / keep_prob, atol=1e-6, rtol=1e-6))
        dropped = bool(jnp.allclose(out[b], 0.0))
        assert kept or dropped, f"row {b} is neither kept nor dropped"

    # eval mode / drop_prob == 0.0 are identity, exactly as in the PyTorch module
    assert drop_path(x, drop_prob, training=False) is x
    assert drop_path(x, 0.0, training=True) is x

    print("KERNEL_OK")
</pallas_src>

<mosaic_0001>
module attributes {stable_mosaic.version = 11 : i64} {
  func.func @_drop_path_kernel(%arg0: i32, %arg1: i32, %arg2: memref<8x1xf32, #tpu.memory_space<vmem>>, %arg3: memref<8x256xf32, #tpu.memory_space<vmem>>, %arg4: memref<8x256xf32, #tpu.memory_space<vmem>>) attributes {dimension_semantics = [#tpu.dimension_semantics<parallel>, #tpu.dimension_semantics<parallel>], iteration_bounds = array<i64: 1, 1>, scalar_prefetch = 0 : i64, scratch_operands = 0 : i64, tpu.core_type = #tpu.core_type<tc>, window_params = [{transform_indices = @transform_0, window_bounds = array<i64: 8, 1>}, {transform_indices = @transform_1, window_bounds = array<i64: 8, 256>}, {transform_indices = @transform_2, window_bounds = array<i64: 8, 256>}]} {
    %c0 = arith.constant 0 : index
    %c0_0 = arith.constant 0 : index
    %0 = vector.load %arg3[%c0, %c0_0] : memref<8x256xf32, #tpu.memory_space<vmem>>, vector<8x256xf32>
    %c0_1 = arith.constant 0 : index
    %c0_2 = arith.constant 0 : index
    %1 = vector.load %arg2[%c0_1, %c0_2] : memref<8x1xf32, #tpu.memory_space<vmem>>, vector<8x1xf32>
    %2 = vector.broadcast %1 : vector<8x1xf32> to vector<8x256xf32>
    %3 = arith.mulf %0, %2 : vector<8x256xf32>
    %c0_3 = arith.constant 0 : index
    %c0_4 = arith.constant 0 : index
    %4 = vector.load %arg4[%c0_3, %c0_4] : memref<8x256xf32, #tpu.memory_space<vmem>>, vector<8x256xf32>
    tpu.vector_store %arg4[%c0_3, %c0_4], %3 {strides = array<i32>} : memref<8x256xf32, #tpu.memory_space<vmem>>, vector<8x256xf32>,
    return
  }
  func.func @transform_0(%arg0: i32, %arg1: i32) -> (i32, i32) {
    %c0_i32 = arith.constant 0 : i32
    %c0_i32_0 = arith.constant 0 : i32
    return %arg0, %c0_i32 : i32, i32
  }
  func.func @transform_1(%arg0: i32, %arg1: i32) -> (i32, i32) {
    %c0_i32 = arith.constant 0 : i32
    return %arg0, %arg1 : i32, i32
  }
  func.func @transform_2(%arg0: i32, %arg1: i32) -> (i32, i32) {
    %c0_i32 = arith.constant 0 : i32
    return %arg0, %arg1 : i32, i32
  }
}

</mosaic_0001>

<bundles_post_ra>
// kernel: tpu_custom_call.1
= control target key start
LH: loop header
LB: loop body
LE: loop exit
PB: predicated region body
PF: predicated region fallthrough
CT: control target
= control target key end

     0   :  { %7 = vsyncpa [#allocation3], 0  ;;  %s148_s0 = inlined_call_operand.vmem [shape: f32[8,1], index: 0, kind: input, shape index: {}]   ;;  %s149_s1 = inlined_call_operand.hbm [shape: f32[8,256], index: 1, kind: input, shape index: {}]   ;;  %s150_s2 = inlined_call_operand.hbm [shape: f32[8,256], index: 2, kind: output, shape index: {}]  }
   0x1   :  { %8 = vsyncpa [#allocation4], 0  ;;  %s103_s9 = smov [#allocation2]   ;;  %s55_s13 = scalar_lea.hbm %s149_s1, 256 }
   0x2   :  { %s17_s10 = sshll.u32 %s103_s9, 4  ;;  %p56_p0 = scmp.ne.s32.totalorder %s149_s1, %s55_s13  ;;  %s18_s10 = int_to_ptr.vmem [resolvable:$true] %s17_s10 }
   0x3   :  { %p59_p1 = scmp.lt.u32.totalorder %s55_s13, %s149_s1 }
   0x5   :  { %p61_p2 = pnand %p59_p1, %p56_p0 }
   0x7   :  { %64 = shalt.err (!%p61_p2)
}
   0x8   :  { %s65_s18 = scalar_lea.vmem %s18_s10, 256  ;;  %p70_p4 = scmp.lt.s32.totalorder %s18_s10, %s18_s10 }
   0x9   :  { %p66_p3 = scmp.ne.s32.totalorder %s18_s10, %s65_s18  ;;  %p71_p5 = scmp.lt.s32.totalorder %s65_s18, %s65_s18 }
   0xb   :  { %p72_p6 = por %p71_p5, %p70_p4 }
   0xd   :  { %p73_p7 = pnand %p72_p6, %p66_p3 }
   0xf   :  { %76 = shalt.err (!%p73_p7)
}
  0x10   :  { %20 = dma.hbm_to_vmem [thread:$0]  %s149_s1, 256, %s18_s10, [#allocation3]  }
  0x11   :  { %99 = dma.done.wait [#allocation3], 256  }
  0x12   :  { %100 = vsyncadd [#allocation3], 4294967040  ;;  %v104_v0 = vmov 0   ;;  %v26_v1 = vld [vmem:[%s148_s0] sm:$0xff]  ;;  %v25_v3 = vld [vmem:[#allocation2 + $0x8] sm:$0xff]  ;;  %s105_s23 = smov [#allocation5]  }
  0x13   :  { %54 = vset.pattern.permute.xlu0 %v104_v0  ;;  %v24_v2 = vld [vmem:[#allocation2] sm:$0xff]  ;;  %s42_s24 = sshll.u32 %s105_s23, 4  ;;  %s43_s24 = int_to_ptr.vmem [resolvable:$true] %s42_s24 }
  0x14   :  { %29 = vperm.xlu0 %54, %v26_v1   ;;  %s77_s1 = scalar_lea.vmem %s43_s24, 256  ;;  %p82_p9 = scmp.lt.s32.totalorder %s43_s24, %s43_s24 }
  0x15   :  { %p78_p8 = scmp.ne.s32.totalorder %s43_s24, %s77_s1  ;;  %p83_p10 = scmp.lt.s32.totalorder %s77_s1, %s77_s1 }
  0x17   :  { %p84_p11 = por %p83_p10, %p82_p9 }
  0x19   :  { %p85_p12 = pnand %p84_p11, %p78_p8 }
  0x93   :  { %v30_v4 = vpop.permute.xlu0 %29 }
  0x94   :  { %v32_v5 = vmul.f32 %v30_v4, %v24_v2  ;;  %v33_v6 = vmul.f32 %v30_v4, %v25_v3 }
  0x96   :  { %34 = vst [vmem:[#allocation5] sm:$0xff] %v32_v5  ;;  %35 = vst [vmem:[#allocation5 + $0x8] sm:$0xff] %v33_v6 }
  0x97   :  { %88 = shalt.err (!%p85_p12)
}
  0x98   :  { %s89_s26 = scalar_lea.hbm %s150_s2, 256 }
  0x99   :  { %p90_p13 = scmp.ne.s32.totalorder %s150_s2, %s89_s26  ;;  %p93_p0 = scmp.lt.u32.totalorder %s89_s26, %s150_s2 }
  0x9b   :  { %p95_p1 = pnand %p93_p0, %p90_p13 }
  0x9d   :  { %98 = shalt.err (!%p95_p1)
}
  0x9e   :  { %45 = dma.vmem_to_hbm [thread:$0]  %s43_s24, 256, %s150_s2, [#allocation4]  }
  0x9f   :  { %101 = dma.done.wait [#allocation4], 256  }
  0xa0   :  { %102 = vsyncadd [#allocation4], 4294967040 }
  0xa1   :  { %49 = vsyncpa [#allocation3], 1 }
  0xa2   :  { %50 = vsyncpa [#allocation4], 1 }

</bundles_post_ra>
